<compile_context>
chip_gen: v7x
topology: tpu7x:2x2x1
jax: 0.10.0
libtpu: 0.0.40
codegen_flags: <defaults>
</compile_context>

<pallas_src>
import functools

import jax
import jax.numpy as jnp
from jax.experimental import pallas as pl
from jax.experimental.pallas import tpu as pltpu

_BIG = 1e30   # "+inf" stand-in for padded codebook columns (never selected)


def _round_up(x, m):
    return ((x + m - 1) // m) * m


def _cdiv(a, b):
    return -(-a // b)


def _vmem_capacity_bytes():
    """Physical VMEM of the current generation (v7x-safe fallback)."""
    try:
        return int(pltpu.get_tpu_info().vmem_capacity_bytes)
    except Exception:
        return 64 << 20          # v7x per-core capacity: safe everywhere


def _vmem_footprint(tile_n, d, kp, mm_isz, out_isz, dist_isz, return_dist, cb_bufs):
    """Approximate VMEM bytes for one pipelined grid step."""
    fixed = cb_bufs * (d * kp * mm_isz + kp * 4)          # codebook + ||e||^2
    per_row = (2 * d * mm_isz                             # x tile (double-buffered)
               + 2 * d * out_isz                          # quantize tile
               + 2 * 4                                    # index lane
               + (2 * kp * dist_isz if return_dist else 0)
               + 4 * kp * 4                               # (tile_n, Kp) f32 temporaries
               + 2 * d * 4)                               # (tile_n, D) f32 temporaries
    return fixed + tile_n * per_row


def _auto_tile_n(n, d, kp, mm_isz, out_isz, dist_isz, return_dist, budget):
    """Biggest MXU-friendly tile whose full footprint fits the VMEM budget."""
    fixed = d * kp * mm_isz + kp * 4 + (1 << 20)          # 1 MiB slack for internals
    per_row = (2 * d * mm_isz + 2 * d * out_isz + 2 * 4
               + (2 * kp * dist_isz if return_dist else 0)
               + 4 * kp * 4 + 2 * d * 4)
    t = (budget - fixed) // max(per_row, 1)
    t = max(8, min(int(t), 2048))
    if n > 8:
        # Keep >=2 grid steps so the single "parallel" axis can shard across
        # v7x's two TensorCores (no effect on v5e/v6e).
        t = min(t, _round_up(_cdiv(n, 2), 8))
    if t >= 256:
        t = (t // 256) * 256       # full 256-wide MXU M-dim (v6e/v7x)
    elif t >= 128:
        t = 128                    # keep v5e's 4x128^2 MXU fully populated
    else:
        t = max(8, (t // 8) * 8)   # f32 sublane multiple
    return t


def _vq_kernel(x_ref, embmm_ref, esq_ref,           # inputs
               q_ref, ind_ref, sse_ref,             # outputs (always present)
               dist_ref=None,                       # optional dist output
               *, n_valid, tile_n):
    i = pl.program_id(0)

    x = x_ref[...]                      # (tile_n, D)  mm_dtype
    e2 = embmm_ref[...]                 # (D, Kp)      mm_dtype  == -2 * embed
    e_sq = esq_ref[...]                 # (1, Kp)      f32 (||embed||^2, +BIG on pads)

    # scores = ||e||^2 - 2 x.e ; the "-2" is already folded into e2, so this is
    # one MXU matmul plus a single add per (tile_n, Kp) element.  argmin(scores)
    # == argmin(dist) because ||x||^2 is constant along the codebook axis.
    xe = jnp.dot(x, e2, preferred_element_type=jnp.float32)        # (tile_n, Kp)
    scores = e_sq + xe

    kp = scores.shape[1]
    col = jax.lax.broadcasted_iota(jnp.int32, scores.shape, 1)
    min_s = jnp.min(scores, axis=1, keepdims=True)
    ind = jnp.min(jnp.where(scores == min_s, col, kp), axis=1)     # lowest-index ties
    ind_ref[...] = ind.reshape(1, 1, tile_n)                       # lane-dense store

    # quantize = embed.T[ind]: gather on the MXU as (-0.5*onehot) @ (-2*embed)^T,
    # which is exact (one nonzero product per output element, f32 accumulation).
    neg_half = jnp.asarray(-0.5, dtype=e2.dtype)
    zero = jnp.asarray(0.0, dtype=e2.dtype)
    onehot = jnp.where(col == ind[:, None], neg_half, zero)        # (tile_n, Kp)
    q = jax.lax.dot_general(onehot, e2, (((1,), (1,)), ((), ())),
                            preferred_element_type=jnp.float32)    # (tile_n, D)
    q_ref[...] = q.astype(q_ref.dtype)

    xf = x.astype(jnp.float32)
    if dist_ref is not None:
        x_sq = jnp.sum(xf * xf, axis=1, keepdims=True)             # (tile_n, 1)
        dist_ref[...] = (x_sq + scores).astype(dist_ref.dtype)

    # Per-tile partial SSE; rows beyond the true N (ragged tail block) masked.
    rows = jax.lax.broadcasted_iota(jnp.int32, (tile_n, 1), 0)
    valid = (rows + i * tile_n) < n_valid
    diff = jnp.where(valid, xf - q, 0.0)
    sse_ref[...] = jnp.sum(diff * diff).reshape(1, 1, 1)


def vector_quantize_forward(x, embed, *, commitment=1.0, tile_n=None,
                            return_dist=True, matmul_dtype=jnp.float32,
                            dist_dtype=jnp.float32):
    """Forward pass of VectorQuantize (eval mode).

    Args:
      x:     [..., D] float input (dim-last layout, e.g. [B, T, D]).
      embed: [D, K]   codebook (same convention as the PyTorch buffer).
      tile_n:        rows per grid step (VMEM-budget auto-selected if None).
      return_dist:   emit the full (N, K) dist matrix (module-parity). Set
                     False when the caller ignores dist to drop the dominant
                     HBM writeback.
      matmul_dtype:  dtype for x / codebook DMA and both MXU matmuls
                     (jnp.bfloat16 halves input DMA + VMEM and doubles MXU
                     rate; f32 accumulation is kept; quantize/argmin pick up
                     bf16 rounding of x and the codebook).
      dist_dtype:    dtype of the dist output stream (bf16 halves the biggest
                     HBM writeback when return_dist=True).

    Returns:
      quantize:  x.shape (x.dtype)   straight-through forward value
      embed_ind: x.shape[:-1] int32
      loss:      scalar float32
      dist:      [N, K] dist_dtype or None (if return_dist=False)
    """
    orig_shape = x.shape
    D, K = embed.shape
    mm_dtype = jnp.dtype(matmul_dtype)
    out_dtype = jnp.dtype(x.dtype)
    dist_dtype = jnp.dtype(dist_dtype)

    flat = x.reshape(-1, D)
    N = flat.shape[0]
    flat_mm = flat.astype(mm_dtype)          # bf16 option: cast at the DMA boundary

    # Codebook prep (once, outside the kernel):
    #   e_sq     = ||embed||^2 (f32; padded columns get +BIG so they never win)
    #   embed_mm = -2 * embed  (distance "-2" folded into the matmul operand;
    #                           the gather matmul uses -0.5 one-hots to undo it)
    embed_f32 = embed.astype(jnp.float32)
    e_sq = jnp.sum(embed_f32 * embed_f32, axis=0, keepdims=True)     # (1, K)
    embed_mm = -2.0 * embed_f32                                      # (D, K)
    Kp = _round_up(K, 128)                   # lane-dense scores / argmin / dist
    if Kp != K:
        embed_mm = jnp.pad(embed_mm, ((0, 0), (0, Kp - K)))
        e_sq = jnp.pad(e_sq, ((0, 0), (0, Kp - K)), constant_values=_BIG)
    embed_mm = embed_mm.astype(mm_dtype)

    mm_isz = mm_dtype.itemsize
    out_isz = out_dtype.itemsize
    dist_isz = dist_dtype.itemsize

    vmem_cap = _vmem_capacity_bytes()
    budget = min(int(vmem_cap * 0.7), 96 << 20)
    if tile_n is None:
        tile_n = _auto_tile_n(N, D, Kp, mm_isz, out_isz, dist_isz,
                              return_dist, budget)
    tile_n = max(8, _round_up(int(tile_n), 8))
    n_tiles = _cdiv(N, tile_n)               # ragged tail masked in-kernel (no pad copy)

    # Scoped VMEM limit sized for the chosen tile, with headroom for a
    # double-buffered codebook (fallback path); never below platform defaults.
    footprint = _vmem_footprint(tile_n, D, Kp, mm_isz, out_isz, dist_isz,
                                return_dist, cb_bufs=2)
    vmem_limit = int(min(int(vmem_cap * 0.85),
                         max(32 << 20, footprint + (4 << 20))))

    out_shapes = [
        jax.ShapeDtypeStruct((N, D), out_dtype),                  # quantize
        jax.ShapeDtypeStruct((n_tiles, 1, tile_n), jnp.int32),    # indices (lane-dense)
        jax.ShapeDtypeStruct((n_tiles, 1, 1), jnp.float32),       # sse partials
    ]
    out_specs = [
        pl.BlockSpec((tile_n, D), lambda i: (i, 0)),
        pl.BlockSpec((1, 1, tile_n), lambda i: (i, 0, 0)),
        pl.BlockSpec((1, 1, 1), lambda i: (i, 0, 0)),
    ]
    if return_dist:
        out_shapes.append(jax.ShapeDtypeStruct((N, Kp), dist_dtype))
        out_specs.append(pl.BlockSpec((tile_n, Kp), lambda i: (i, 0)))

    flops = 4 * N * D * Kp                   # distance matmul + one-hot gather matmul
    bytes_accessed = (N * D * mm_isz + D * Kp * mm_isz + Kp * 4
                      + N * D * out_isz + n_tiles * tile_n * 4 + n_tiles * 4
                      + (N * Kp * dist_isz if return_dist else 0))

    kernel = functools.partial(_vq_kernel, n_valid=N, tile_n=tile_n)
    compiler_params = pltpu.CompilerParams(
        dimension_semantics=("parallel",),   # no cross-step carry
        vmem_limit_bytes=vmem_limit)
    cost = pl.CostEstimate(flops=flops, transcendentals=0,
                           bytes_accessed=bytes_accessed)

    def _call(single_buffer_codebook):
        cb_kw = (dict(pipeline_mode=pl.Buffered(1))
                 if single_buffer_codebook else {})
        in_specs = [
            pl.BlockSpec((tile_n, D), lambda i: (i, 0)),           # x tile
            pl.BlockSpec((D, Kp), lambda i: (0, 0), **cb_kw),      # -2*embed (invariant)
            pl.BlockSpec((1, Kp), lambda i: (0, 0), **cb_kw),      # ||embed||^2
        ]
        grid_spec = pltpu.PrefetchScalarGridSpec(
            num_scalar_prefetch=0, grid=(n_tiles,),
            in_specs=in_specs, out_specs=out_specs)
        return pl.pallas_call(kernel, out_shape=tuple(out_shapes),
                              grid_spec=grid_spec,
                              compiler_params=compiler_params,
                              cost_estimate=cost)(flat_mm, embed_mm, e_sq)

    want_single = hasattr(pl, "Buffered")
    try:
        outs = _call(want_single)
    except Exception:
        if not want_single:
            raise
        # Fall back to default (double-buffered, but still fetched-once) specs
        # if this JAX build rejects buffer_count=1 on pipelined inputs.
        outs = _call(False)

    if return_dist:
        q_flat, ind_tiles, sse, dist = outs
        if Kp != K:
            dist = dist[:, :K]
    else:
        q_flat, ind_tiles, sse = outs
        dist = None

    loss = (jnp.sum(sse) / jnp.float32(N * D)) * jnp.float32(commitment)
    quantize = q_flat.reshape(orig_shape)
    embed_ind = ind_tiles.reshape(-1)[:N].reshape(orig_shape[:-1])
    # straight-through: forward value of input + (quantize - input).detach()
    # equals quantize; gradients are not modeled here (forward-only kernel).
    return quantize, embed_ind, loss, dist


def _reference(x, embed, commitment=1.0):
    D = embed.shape[0]
    flat = x.reshape(-1, D)
    dist = (jnp.sum(flat ** 2, axis=1, keepdims=True)
            - 2.0 * flat @ embed
            + jnp.sum(embed ** 2, axis=0, keepdims=True))
    ind = jnp.argmin(dist, axis=1)
    q = embed.T[ind].reshape(x.shape)
    loss = jnp.mean((x - q) ** 2) * commitment
    return q, ind.reshape(x.shape[:-1]), loss, dist


if __name__ == "__main__":
    key = jax.random.PRNGKey(0)

    # Case 1: module-sized small config (dim=32, n_embed=64). K is ragged
    # (64 < 128) so the codebook-padding path is exercised; tile auto-select
    # splits N=16 into two tiles (parallel grid axis).
    dim, n_embed, B, T = 32, 64, 2, 8
    kx, ke, key = jax.random.split(key, 3)
    x = jax.random.normal(kx, (B, T, dim), dtype=jnp.float32)
    embed = jax.random.normal(ke, (dim, n_embed), dtype=jnp.float32)

    q, ind, loss, dist = vector_quantize_forward(x, embed, commitment=1.0)
    jax.block_until_ready((q, ind, loss, dist))

    q_r, ind_r, loss_r, dist_r = _reference(x, embed, commitment=1.0)
    assert q.shape == x.shape and dist.shape == (B * T, n_embed)
    assert jnp.allclose(q, q_r, atol=1e-4), "quantize mismatch"
    assert jnp.all(ind == ind_r.astype(ind.dtype)), "index mismatch"
    assert jnp.allclose(loss, loss_r, rtol=1e-4, atol=1e-5), "loss mismatch"
    assert jnp.allclose(dist, dist_r, rtol=1e-4, atol=1e-3), "dist mismatch"

    # Case 2: multi-tile grid with a ragged tail block (N=192, tile_n=128 ->
    # 2 tiles, 64 valid rows in the last one) exercising in-kernel masking and
    # the lane-dense index store path.
    dim2, n_embed2, B2, T2 = 128, 256, 2, 96
    kx2, ke2, key = jax.random.split(key, 3)
    x2 = jax.random.normal(kx2, (B2, T2, dim2), dtype=jnp.float32)
    embed2 = jax.random.normal(ke2, (dim2, n_embed2), dtype=jnp.float32)

    q2, ind2, loss2, dist2 = vector_quantize_forward(
        x2, embed2, commitment=0.25, tile_n=128)
    jax.block_until_ready((q2, ind2, loss2, dist2))

    q2_r, ind2_r, loss2_r, dist2_r = _reference(x2, embed2, commitment=0.25)
    assert jnp.allclose(q2, q2_r, atol=1e-4), "quantize mismatch (case 2)"
    assert jnp.all(ind2 == ind2_r.astype(ind2.dtype)), "index mismatch (case 2)"
    assert jnp.allclose(loss2, loss2_r, rtol=1e-4, atol=1e-5), "loss mismatch (case 2)"
    assert jnp.allclose(dist2, dist2_r, rtol=1e-4, atol=1e-3), "dist mismatch (case 2)"

    # Case 3: bf16 DMA/matmul path with return_dist=False (smoke + internal
    # consistency: quantize rows must be the bf16-rounded codebook columns at
    # the returned indices, and the loss must be finite).
    dim3, n_embed3, B3, T3 = 64, 128, 2, 64
    kx3, ke3, key = jax.random.split(key, 3)
    x3 = jax.random.normal(kx3, (B3, T3, dim3), dtype=jnp.float32)
    embed3 = jax.random.normal(ke3, (dim3, n_embed3), dtype=jnp.float32)

    q3, ind3, loss3, dist3 = vector_quantize_forward(
        x3, embed3, commitment=1.0, return_dist=False,
        matmul_dtype=jnp.bfloat16)
    jax.block_until_ready((q3, ind3, loss3))

    assert dist3 is None
    assert jnp.all((ind3 >= 0) & (ind3 < n_embed3)), "index range (case 3)"
    embed3_bf = embed3.astype(jnp.bfloat16).astype(jnp.float32)
    q3_expected = embed3_bf.T[ind3.reshape(-1)].reshape(x3.shape)
    assert jnp.allclose(q3, q3_expected, rtol=1e-3, atol=1e-3), "gather mismatch (case 3)"
    assert jnp.isfinite(loss3), "loss not finite (case 3)"

    print("KERNEL_OK")
</pallas_src>

<mosaic_0001>
module attributes {stable_mosaic.version = 11 : i64} {
  func.func @_vq_kernel(%arg0: i32, %arg1: memref<8x32xf32, #tpu.memory_space<vmem>>, %arg2: memref<32x128xf32, #tpu.memory_space<vmem>>, %arg3: memref<1x128xf32, #tpu.memory_space<vmem>>, %arg4: memref<8x32xf32, #tpu.memory_space<vmem>>, %arg5: memref<1x1x8xi32, #tpu.memory_space<vmem>>, %arg6: memref<1x1x1xf32, #tpu.memory_space<vmem>>, %arg7: memref<8x128xf32, #tpu.memory_space<vmem>>) attributes {dimension_semantics = [#tpu.dimension_semantics<parallel>], iteration_bounds = array<i64: 2>, scalar_prefetch = 0 : i64, scratch_operands = 0 : i64, tpu.core_type = #tpu.core_type<tc>, window_params = [{transform_indices = @transform_0, window_bounds = array<i64: 8, 32>}, {pipeline_mode = #tpu.pipeline_mode<synchronous>, transform_indices = @transform_1, window_bounds = array<i64: 32, 128>}, {pipeline_mode = #tpu.pipeline_mode<synchronous>, transform_indices = @transform_2, window_bounds = array<i64: 1, 128>}, {transform_indices = @transform_3, window_bounds = array<i64: 8, 32>}, {transform_indices = @transform_4, window_bounds = array<i64: 1, 1, 8>}, {transform_indices = @transform_5, window_bounds = array<i64: 1, 1, 1>}, {transform_indices = @transform_6, window_bounds = array<i64: 8, 128>}]} {
    %c0 = arith.constant 0 : index
    %c0_0 = arith.constant 0 : index
    %0 = vector.load %arg1[%c0, %c0_0] : memref<8x32xf32, #tpu.memory_space<vmem>>, vector<8x32xf32>
    %c0_1 = arith.constant 0 : index
    %c0_2 = arith.constant 0 : index
    %1 = vector.load %arg2[%c0_1, %c0_2] : memref<32x128xf32, #tpu.memory_space<vmem>>, vector<32x128xf32>
    %c0_3 = arith.constant 0 : index
    %c0_4 = arith.constant 0 : index
    %2 = vector.load %arg3[%c0_3, %c0_4] : memref<1x128xf32, #tpu.memory_space<vmem>>, vector<1x128xf32>
    %cst = arith.constant dense<0.000000e+00> : vector<8x128xf32>
    %3 = tpu.matmul %0, %1, %cst {dimension_numbers = #tpu.dot_dimension_numbers<[1], [0], [0], [1], [0, 0, 1, 1], [], []>} : vector<8x32xf32>, vector<32x128xf32>, vector<8x128xf32> -> vector<8x128xf32>
    %4 = vector.broadcast %2 : vector<1x128xf32> to vector<8x128xf32>
    %5 = arith.addf %4, %3 : vector<8x128xf32>
    %6 = tpu.iota {dimensions = array<i32: 1>} : vector<8x128xi32>
    %cst_5 = arith.constant dense<0x7F800000> : vector<8xf32>
    %7 = vector.multi_reduction <minimumf>, %5, %cst_5 [1] : vector<8x128xf32> to vector<8xf32>
    %8 = vector.shape_cast %7 : vector<8xf32> to vector<8x1xf32>
    %9 = vector.broadcast %8 : vector<8x1xf32> to vector<8x128xf32>
    %10 = arith.cmpf oeq, %5, %9 : vector<8x128xf32>
    %c128_i32 = arith.constant 128 : i32
    %11 = vector.broadcast %c128_i32 : i32 to vector<8x128xi32>
    %12 = arith.select %10, %6, %11 : vector<8x128xi1>, vector<8x128xi32>
    %cst_6 = arith.constant dense<2147483647> : vector<8xi32>
    %13 = vector.multi_reduction <minsi>, %12, %cst_6 [1] : vector<8x128xi32> to vector<8xi32>
    %14 = vector.shape_cast %13 : vector<8xi32> to vector<1x1x8xi32>
    %c0_7 = arith.constant 0 : index
    %c0_8 = arith.constant 0 : index
    %c0_9 = arith.constant 0 : index
    %15 = vector.load %arg5[%c0_7, %c0_8, %c0_9] : memref<1x1x8xi32, #tpu.memory_space<vmem>>, vector<1x1x8xi32>
    tpu.vector_store %arg5[%c0_7, %c0_8, %c0_9], %14 {strides = array<i32>} : memref<1x1x8xi32, #tpu.memory_space<vmem>>, vector<1x1x8xi32>,
    %16 = vector.shape_cast %13 : vector<8xi32> to vector<8x1xi32>
    %17 = vector.broadcast %16 : vector<8x1xi32> to vector<8x128xi32>
    %18 = arith.cmpi eq, %6, %17 : vector<8x128xi32>
    %cst_10 = arith.constant -5.000000e-01 : f32
    %cst_11 = arith.constant 0.000000e+00 : f32
    %19 = vector.broadcast %cst_10 : f32 to vector<8x128xf32>
    %20 = vector.broadcast %cst_11 : f32 to vector<8x128xf32>
    %21 = arith.select %18, %19, %20 : vector<8x128xi1>, vector<8x128xf32>
    %cst_12 = arith.constant dense<0.000000e+00> : vector<8x32xf32>
    %22 = tpu.matmul %21, %1, %cst_12 {dimension_numbers = #tpu.dot_dimension_numbers<[1], [1], [0], [0], [0, 0, 1, 0], [], []>} : vector<8x128xf32>, vector<32x128xf32>, vector<8x32xf32> -> vector<8x32xf32>
    %c0_13 = arith.constant 0 : index
    %c0_14 = arith.constant 0 : index
    %23 = vector.load %arg4[%c0_13, %c0_14] : memref<8x32xf32, #tpu.memory_space<vmem>>, vector<8x32xf32>
    tpu.vector_store %arg4[%c0_13, %c0_14], %22 {strides = array<i32>} : memref<8x32xf32, #tpu.memory_space<vmem>>, vector<8x32xf32>,
    %24 = arith.mulf %0, %0 : vector<8x32xf32>
    %cst_15 = arith.constant dense<0.000000e+00> : vector<8xf32>
    %25 = vector.multi_reduction <add>, %24, %cst_15 [1] : vector<8x32xf32> to vector<8xf32>
    %26 = vector.shape_cast %25 : vector<8xf32> to vector<8x1xf32>
    %27 = vector.broadcast %26 : vector<8x1xf32> to vector<8x128xf32>
    %28 = arith.addf %27, %5 : vector<8x128xf32>
    %c0_16 = arith.constant 0 : index
    %c0_17 = arith.constant 0 : index
    %29 = vector.load %arg7[%c0_16, %c0_17] : memref<8x128xf32, #tpu.memory_space<vmem>>, vector<8x128xf32>
    tpu.vector_store %arg7[%c0_16, %c0_17], %28 {strides = array<i32>} : memref<8x128xf32, #tpu.memory_space<vmem>>, vector<8x128xf32>,
    %30 = tpu.iota {dimensions = array<i32: 0>} : vector<8x1xi32>
    %c8_i32 = arith.constant 8 : i32
    %31 = arith.muli %arg0, %c8_i32 : i32
    %32 = vector.broadcast %31 : i32 to vector<8x1xi32>
    %33 = arith.addi %30, %32 : vector<8x1xi32>
    %c16_i32 = arith.constant 16 : i32
    %34 = vector.broadcast %c16_i32 : i32 to vector<8x1xi32>
    %35 = arith.cmpi slt, %33, %34 : vector<8x1xi32>
    %36 = arith.subf %0, %22 : vector<8x32xf32>
    %cst_18 = arith.constant 0.000000e+00 : f32
    %37 = vector.shape_cast %35 : vector<8x1xi1> to vector<8x1xi1>
    %38 = vector.broadcast %37 : vector<8x1xi1> to vector<8x32xi1>
    %39 = vector.broadcast %cst_18 : f32 to vector<8x32xf32>
    %40 = arith.select %38, %36, %39 : vector<8x32xi1>, vector<8x32xf32>
    %41 = arith.mulf %40, %40 : vector<8x32xf32>
    %42 = vector.shape_cast %41 : vector<8x32xf32> to vector<1x8x32xf32>
    %cst_19 = arith.constant dense<0.000000e+00> : vector<1xf32>
    %43 = vector.multi_reduction <add>, %42, %cst_19 [1, 2] : vector<1x8x32xf32> to vector<1xf32>
    %44 = vector.shape_cast %43 : vector<1xf32> to vector<1x1x1xf32>
    %45 = vector.extract %44[0, 0, 0] : f32 from vector<1x1x1xf32>
    %46 = vector.broadcast %45 : f32 to vector<1x1x1xf32>
    %c0_20 = arith.constant 0 : index
    %c0_21 = arith.constant 0 : index
    %c0_22 = arith.constant 0 : index
    %47 = vector.load %arg6[%c0_20, %c0_21, %c0_22] : memref<1x1x1xf32, #tpu.memory_space<vmem>>, vector<1x1x1xf32>
    tpu.vector_store %arg6[%c0_20, %c0_21, %c0_22], %46 {strides = array<i32>} : memref<1x1x1xf32, #tpu.memory_space<vmem>>, vector<1x1x1xf32>,
    return
  }
  func.func @transform_0(%arg0: i32) -> (i32, i32) {
    %c0_i32 = arith.constant 0 : i32
    %c0_i32_0 = arith.constant 0 : i32
    return %arg0, %c0_i32 : i32, i32
  }
  func.func @transform_1(%arg0: i32) -> (i32, i32) {
    %c0_i32 = arith.constant 0 : i32
    %c0_i32_0 = arith.constant 0 : i32
    %c0_i32_1 = arith.constant 0 : i32
    return %c0_i32, %c0_i32_0 : i32, i32
  }
  func.func @transform_2(%arg0: i32) -> (i32, i32) {
    %c0_i32 = arith.constant 0 : i32
    %c0_i32_0 = arith.constant 0 : i32
    %c0_i32_1 = arith.constant 0 : i32
    return %c0_i32, %c0_i32_0 : i32, i32
  }
  func.func @transform_3(%arg0: i32) -> (i32, i32) {
    %c0_i32 = arith.constant 0 : i32
    %c0_i32_0 = arith.constant 0 : i32
    return %arg0, %c0_i32 : i32, i32
  }
  func.func @transform_4(%arg0: i32) -> (i32, i32, i32) {
    %c0_i32 = arith.constant 0 : i32
    %c0_i32_0 = arith.constant 0 : i32
    %c0_i32_1 = arith.constant 0 : i32
    return %arg0, %c0_i32, %c0_i32_0 : i32, i32, i32
  }
  func.func @transform_5(%arg0: i32) -> (i32, i32, i32) {
    %c0_i32 = arith.constant 0 : i32
    %c0_i32_0 = arith.constant 0 : i32
    %c0_i32_1 = arith.constant 0 : i32
    return %arg0, %c0_i32, %c0_i32_0 : i32, i32, i32
  }
  func.func @transform_6(%arg0: i32) -> (i32, i32) {
    %c0_i32 = arith.constant 0 : i32
    %c0_i32_0 = arith.constant 0 : i32
    return %arg0, %c0_i32 : i32, i32
  }
}

module attributes {stable_mosaic.version = 11 : i64} {
  func.func @_vq_kernel(%arg0: i32, %arg1: memref<8x32xf32, #tpu.memory_space<vmem>>, %arg2: memref<32x128xf32, #tpu.memory_space<vmem>>, %arg3: memref<1x128xf32, #tpu.memory_space<vmem>>, %arg4: memref<8x32xf32, #tpu.memory_space<vmem>>, %arg5: memref<1x1x8xi32, #tpu.memory_space<vmem>>, %arg6: memref<1x1x1xf32, #tpu.memory_space<vmem>>, %arg7: memref<8x128xf32, #tpu.memory_space<vmem>>) attributes {dimension_semantics = [#tpu.dimension_semantics<parallel>], iteration_bounds = array<i64: 2>, scalar_prefetch = 0 : i64, scratch_operands = 0 : i64, tpu.core_type = #tpu.core_type<tc>, window_params = [{transform_indices = @transform_0, window_bounds = array<i64: 8, 32>}, {pipeline_mode = #tpu.pipeline_mode<synchronous>, transform_indices = @transform_1, window_bounds = array<i64: 32, 128>}, {pipeline_mode = #tpu.pipeline_mode<synchronous>, transform_indices = @transform_2, window_bounds = array<i64: 1, 128>}, {transform_indices = @transform_3, window_bounds = array<i64: 8, 32>}, {transform_indices = @transform_4, window_bounds = array<i64: 1, 1, 8>}, {transform_indices = @transform_5, window_bounds = array<i64: 1, 1, 1>}, {transform_indices = @transform_6, window_bounds = array<i64: 8, 128>}]} {
    %c0 = arith.constant 0 : index
    %c0_0 = arith.constant 0 : index
    %0 = vector.load %arg1[%c0, %c0_0] : memref<8x32xf32, #tpu.memory_space<vmem>>, vector<8x32xf32>
    %c0_1 = arith.constant 0 : index
    %c0_2 = arith.constant 0 : index
    %1 = vector.load %arg2[%c0_1, %c0_2] : memref<32x128xf32, #tpu.memory_space<vmem>>, vector<32x128xf32>
    %c0_3 = arith.constant 0 : index
    %c0_4 = arith.constant 0 : index
    %2 = vector.load %arg3[%c0_3, %c0_4] : memref<1x128xf32, #tpu.memory_space<vmem>>, vector<1x128xf32>
    %cst = arith.constant dense<0.000000e+00> : vector<8x128xf32>
    %3 = tpu.matmul %0, %1, %cst {dimension_numbers = #tpu.dot_dimension_numbers<[1], [0], [0], [1], [0, 0, 1, 1], [], []>} : vector<8x32xf32>, vector<32x128xf32>, vector<8x128xf32> -> vector<8x128xf32>
    %4 = vector.broadcast %2 : vector<1x128xf32> to vector<8x128xf32>
    %5 = arith.addf %4, %3 : vector<8x128xf32>
    %6 = tpu.iota {dimensions = array<i32: 1>} : vector<8x128xi32>
    %cst_5 = arith.constant dense<0x7F800000> : vector<8xf32>
    %7 = vector.multi_reduction <minimumf>, %5, %cst_5 [1] : vector<8x128xf32> to vector<8xf32>
    %8 = vector.shape_cast %7 : vector<8xf32> to vector<8x1xf32>
    %9 = vector.broadcast %8 : vector<8x1xf32> to vector<8x128xf32>
    %10 = arith.cmpf oeq, %5, %9 : vector<8x128xf32>
    %c128_i32 = arith.constant 128 : i32
    %11 = vector.broadcast %c128_i32 : i32 to vector<8x128xi32>
    %12 = arith.select %10, %6, %11 : vector<8x128xi1>, vector<8x128xi32>
    %cst_6 = arith.constant dense<2147483647> : vector<8xi32>
    %13 = vector.multi_reduction <minsi>, %12, %cst_6 [1] : vector<8x128xi32> to vector<8xi32>
    %14 = vector.shape_cast %13 : vector<8xi32> to vector<1x1x8xi32>
    %c0_7 = arith.constant 0 : index
    %c0_8 = arith.constant 0 : index
    %c0_9 = arith.constant 0 : index
    %15 = vector.load %arg5[%c0_7, %c0_8, %c0_9] : memref<1x1x8xi32, #tpu.memory_space<vmem>>, vector<1x1x8xi32>
    tpu.vector_store %arg5[%c0_7, %c0_8, %c0_9], %14 {strides = array<i32>} : memref<1x1x8xi32, #tpu.memory_space<vmem>>, vector<1x1x8xi32>,
    %16 = vector.shape_cast %13 : vector<8xi32> to vector<8x1xi32>
    %17 = vector.broadcast %16 : vector<8x1xi32> to vector<8x128xi32>
    %18 = arith.cmpi eq, %6, %17 : vector<8x128xi32>
    %cst_10 = arith.constant -5.000000e-01 : f32
    %cst_11 = arith.constant 0.000000e+00 : f32
    %19 = vector.broadcast %cst_10 : f32 to vector<8x128xf32>
    %20 = vector.broadcast %cst_11 : f32 to vector<8x128xf32>
    %21 = arith.select %18, %19, %20 : vector<8x128xi1>, vector<8x128xf32>
    %cst_12 = arith.constant dense<0.000000e+00> : vector<8x32xf32>
    %22 = tpu.matmul %21, %1, %cst_12 {dimension_numbers = #tpu.dot_dimension_numbers<[1], [1], [0], [0], [0, 0, 1, 0], [], []>} : vector<8x128xf32>, vector<32x128xf32>, vector<8x32xf32> -> vector<8x32xf32>
    %c0_13 = arith.constant 0 : index
    %c0_14 = arith.constant 0 : index
    %23 = vector.load %arg4[%c0_13, %c0_14] : memref<8x32xf32, #tpu.memory_space<vmem>>, vector<8x32xf32>
    tpu.vector_store %arg4[%c0_13, %c0_14], %22 {strides = array<i32>} : memref<8x32xf32, #tpu.memory_space<vmem>>, vector<8x32xf32>,
    %24 = arith.mulf %0, %0 : vector<8x32xf32>
    %cst_15 = arith.constant dense<0.000000e+00> : vector<8xf32>
    %25 = vector.multi_reduction <add>, %24, %cst_15 [1] : vector<8x32xf32> to vector<8xf32>
    %26 = vector.shape_cast %25 : vector<8xf32> to vector<8x1xf32>
    %27 = vector.broadcast %26 : vector<8x1xf32> to vector<8x128xf32>
    %28 = arith.addf %27, %5 : vector<8x128xf32>
    %c0_16 = arith.constant 0 : index
    %c0_17 = arith.constant 0 : index
    %29 = vector.load %arg7[%c0_16, %c0_17] : memref<8x128xf32, #tpu.memory_space<vmem>>, vector<8x128xf32>
    tpu.vector_store %arg7[%c0_16, %c0_17], %28 {strides = array<i32>} : memref<8x128xf32, #tpu.memory_space<vmem>>, vector<8x128xf32>,
    %30 = tpu.iota {dimensions = array<i32: 0>} : vector<8x1xi32>
    %c8_i32 = arith.constant 8 : i32
    %31 = arith.muli %arg0, %c8_i32 : i32
    %32 = vector.broadcast %31 : i32 to vector<8x1xi32>
    %33 = arith.addi %30, %32 : vector<8x1xi32>
    %c16_i32 = arith.constant 16 : i32
    %34 = vector.broadcast %c16_i32 : i32 to vector<8x1xi32>
    %35 = arith.cmpi slt, %33, %34 : vector<8x1xi32>
    %36 = arith.subf %0, %22 : vector<8x32xf32>
    %cst_18 = arith.constant 0.000000e+00 : f32
    %37 = vector.shape_cast %35 : vector<8x1xi1> to vector<8x1xi1>
    %38 = vector.broadcast %37 : vector<8x1xi1> to vector<8x32xi1>
    %39 = vector.broadcast %cst_18 : f32 to vector<8x32xf32>
    %40 = arith.select %38, %36, %39 : vector<8x32xi1>, vector<8x32xf32>
    %41 = arith.mulf %40, %40 : vector<8x32xf32>
    %42 = vector.shape_cast %41 : vector<8x32xf32> to vector<1x8x32xf32>
    %cst_19 = arith.constant dense<0.000000e+00> : vector<1xf32>
    %43 = vector.multi_reduction <add>, %42, %cst_19 [1, 2] : vector<1x8x32xf32> to vector<1xf32>
    %44 = vector.shape_cast %43 : vector<1xf32> to vector<1x1x1xf32>
    %45 = vector.extract %44[0, 0, 0] : f32 from vector<1x1x1xf32>
    %46 = vector.broadcast %45 : f32 to vector<1x1x1xf32>
    %c0_20 = arith.constant 0 : index
    %c0_21 = arith.constant 0 : index
    %c0_22 = arith.constant 0 : index
    %47 = vector.load %arg6[%c0_20, %c0_21, %c0_22] : memref<1x1x1xf32, #tpu.memory_space<vmem>>, vector<1x1x1xf32>
    tpu.vector_store %arg6[%c0_20, %c0_21, %c0_22], %46 {strides = array<i32>} : memref<1x1x1xf32, #tpu.memory_space<vmem>>, vector<1x1x1xf32>,
    return
  }
  func.func @transform_0(%arg0: i32) -> (i32, i32) {
    %c0_i32 = arith.constant 0 : i32
    %c0_i32_0 = arith.constant 0 : i32
    return %arg0, %c0_i32 : i32, i32
  }
  func.func @transform_1(%arg0: i32) -> (i32, i32) {
    %c0_i32 = arith.constant 0 : i32
    %c0_i32_0 = arith.constant 0 : i32
    %c0_i32_1 = arith.constant 0 : i32
    return %c0_i32, %c0_i32_0 : i32, i32
  }
  func.func @transform_2(%arg0: i32) -> (i32, i32) {
    %c0_i32 = arith.constant 0 : i32
    %c0_i32_0 = arith.constant 0 : i32
    %c0_i32_1 = arith.constant 0 : i32
    return %c0_i32, %c0_i32_0 : i32, i32
  }
  func.func @transform_3(%arg0: i32) -> (i32, i32) {
    %c0_i32 = arith.constant 0 : i32
    %c0_i32_0 = arith.constant 0 : i32
    return %arg0, %c0_i32 : i32, i32
  }
  func.func @transform_4(%arg0: i32) -> (i32, i32, i32) {
    %c0_i32 = arith.constant 0 : i32
    %c0_i32_0 = arith.constant 0 : i32
    %c0_i32_1 = arith.constant 0 : i32
    return %arg0, %c0_i32, %c0_i32_0 : i32, i32, i32
  }
  func.func @transform_5(%arg0: i32) -> (i32, i32, i32) {
    %c0_i32 = arith.constant 0 : i32
    %c0_i32_0 = arith.constant 0 : i32
    %c0_i32_1 = arith.constant 0 : i32
    return %arg0, %c0_i32, %c0_i32_0 : i32, i32, i32
  }
  func.func @transform_6(%arg0: i32) -> (i32, i32) {
    %c0_i32 = arith.constant 0 : i32
    %c0_i32_0 = arith.constant 0 : i32
    return %arg0, %c0_i32 : i32, i32
  }
}

</mosaic_0001>

<bundles_post_ra>
// kernel: tpu_custom_call.1
= control target key start
LH: loop header
LB: loop body
LE: loop exit
PB: predicated region body
PF: predicated region fallthrough
CT: control target
= control target key end

     0   :  { %12 = vsyncpa [#allocation3], 0  ;;  %s1397_s0 = inlined_call_operand.hbm [shape: f32[16,32], index: 0, kind: input, shape index: {}]   ;;  %s1398_s1 = inlined_call_operand.hbm [shape: f32[32,128], index: 1, kind: input, shape index: {}]   ;;  %s1399_s2 = inlined_call_operand.vmem [shape: f32[1,128], index: 2, kind: input, shape index: {}]   ;;  %s1400_s3 = inlined_call_operand.hbm [shape: f32[16,32], index: 3, kind: output, shape index: {0}]   ;;  %s1401_s4 = inlined_call_operand.hbm [shape: s32[2,1,8], index: 4, kind: output, shape index: {1}]   ;;  %s1402_s5 = inlined_call_operand.vmem [shape: f32[2,1,1], index: 5, kind: output, shape index: {2}]   ;;  %s1403_s6 = inlined_call_operand.hbm [shape: f32[16,128], index: 6, kind: output, shape index: {3}]  }
   0x1   :  { %14 = vsyncpa [#allocation3 + $0x1], 0 }
   0x2   :  { %15 = vsyncpa [#allocation6], 0 }
   0x3   :  { %16 = vsyncpa [#allocation4], 0 }
   0x4   :  { %18 = vsyncpa [#allocation4 + $0x1], 0 }
   0x5   :  { %19 = vsyncpa [#allocation9], 0 }
   0x6   :  { %21 = vsyncpa [#allocation9 + $0x1], 0  ;;  %s1111_s21 = smov 0   ;;  %s1113_s22 = smov 0  }
   0x7   :  { %s1115_s23 = smov 0   ;;  %s1117_s24 = smov 0  }
   0x8 LB: > { %s1132_s25 = sadd.s32 4294967295, %s1063_s24   ;;  %s1407_s26 = sadd.s32 4294967294, %s1063_s24   ;;  %s1063_s24 = sphi %s1117_s24, %s1427_s24   ;;  %s1059_s23 = sphi %s1115_s23, %s1426_s23   ;;  %s1055_s22 = sphi %s1113_s22, %s1425_s22   ;;  %s1051_s21 = sphi %s1111_s21, %s1424_s21  }
   0x9   : > { %p47_p0 = scmp.ne.s32.totalorder %s1055_s22, %s1051_s21  ;;  %p1404_p1 = scmp.eq.s32.totalorder %s1132_s25, 0 }
   0xa   : > { %p119_p3 = scmp.eq.s32.totalorder %s1407_s26, 1  ;;  %p735_p5 = scmp.ge.s32.totalorder %s1063_s24, 1 }
   0xb   : > { %p1143_p4 = por %p1404_p1, %p47_p0  ;;  %p204_p7 = scmp.lt.s32.totalorder %s1063_s24, 3 }
   0xc   : > { %p1148_p6 = por %p119_p3, %p47_p0  ;;  %s1065_s30 = smov [#allocation5]  }
   0xd   : > { %s1409_s27 = scalar_select %p1143_p4, 1, 0 }
   0xe   : > { %s1410_s28 = scalar_select %p1148_p6, 1, 0 }
   0xf   : > { %p1153_p8 = pnand %p735_p5, %p204_p7  ;;  %s216_s7 = sshll.u32 %s1065_s30, 4  ;;  %s1157_s7 = int_to_ptr.vmem [resolvable:$true] %s216_s7 }
  0x10   : > { %s1169_s9 = sadd.s32 1, %s1063_s24   ;;  %s34_s10 = sadd.s32 1, %s1059_s23 }
  0x11   : > { %s1411_s29 = scalar_select %p1153_p8, 1, 0 }
  0x12   : > { %p814_p9 = pneg %p1153_p8  ;;  %s31_s11 = ssub.s32 %s1063_s24, %s1169_s9 }
  0x13   : > { %s875_s14 = scalar_lea.hbm %s1398_s1, 512 }
  0x14   : > { %p1164_p11 = pnand %p814_p9, %p1404_p1  ;;  %p876_p12 = scmp.ne.s32.totalorder %s1398_s1, %s875_s14 }
  0x15   : > { %p882_p5 = scmp.lt.u32.totalorder %s875_s14, %s1398_s1 }
  0x16   : > { %p877_p13 = pneg %p1164_p11 }
  0x18   : > { %p878_p0 = pnand %p877_p13, %p876_p12 }
  0x1a   : > { %p879_p3 = pneg %p878_p0 }
  0x1c   : > { %p884_p7 = pnand %p882_p5, %p879_p3 }
  0x1e   : > { %887 = shalt.err (!%p884_p7)
}
  0x1f   : > { %s888_s19 = scalar_lea.vmem %s1157_s7, 512  ;;  %p896_p2 = scmp.lt.s32.totalorder %s1157_s7, %s1157_s7 }
  0x20   : > { %p889_p9 = scmp.ne.s32.totalorder %s1157_s7, %s888_s19  ;;  %p897_p6 = scmp.lt.s32.totalorder %s888_s19, %s888_s19 }
  0x22   : > { %p891_p10 = pnand %p889_p9, %p877_p13  ;;  %p898_p4 = por %p897_p6, %p896_p2 }
  0x24   : > { %p892_p1 = pneg %p891_p10 }
  0x26   : > { %p899_p8 = pnand %p898_p4, %p892_p1 }
  0x28   : > { %902 = shalt.err (!%p899_p8)
}
  0x29   : > { %s1066_s20 = smov 128   ;;  %s1067_s30 = smov 8  }
  0x2a   : > { %817 = dma.hbm_to_vmem [thread:$0]  (!%p1164_p11), %s1398_s1, 512, %s1157_s7, [#allocation6], %s1066_s20, %s1066_s20, %s1067_s30  }
  0x2b   : > { %p32_p2 = scmp.eq.s32.totalorder %s31_s11, 0  ;;  %p41_p1 = scmp.ne.s32.totalorder %s1059_s23, %s1055_s22 }
  0x2c   : > { %p42_p4 = scmp.eq.s32.totalorder %s1063_s24, 0  ;;  %p833_p6 = scmp.lt.s32.totalorder %s1063_s24, 2 }
  0x2d   : > { %s1200_s14 = scalar_select %p32_p2, %s1059_s23, %s34_s10  }
  0x2e   : > { %p43_p8 = por %p42_p4, %p41_p1  ;;  %p1413_p10 = scmp.eq.s32.totalorder %s1132_s25, 1 }
  0x2f   : > { %s233_s16 = sand.u32 1, %s1059_s23   ;;  %s739_s17 = sshll.u32 %s1063_s24, 7 }
  0x30   : > { %p1204_p12 = por %p1413_p10, %p41_p1  ;;  %s738_s18 = sshll.u32 %s233_s16, 3 }
  0x31   : > { %s1213_s12 = scalar_lea.hbm %s1397_s0, %s739_s17  ;;  %s237_s7 = scalar_lea.vmem [#allocation2], %s738_s18 }
  0x32   : > { %s244_s10 = sshll.u32 %s237_s7, 4  ;;  %p1215_p11 = pnand %p833_p6, %p43_p8  ;;  %s1219_s10 = int_to_ptr.vmem [resolvable:$true] %s244_s10 }
  0x33   : > { %s234_s20 = scalar_lea.sflag [#allocation3], %s233_s16  ;;  %s903_s30 = scalar_lea.hbm %s1213_s12, 128 }
  0x34   : > { %p904_p13 = scmp.ne.s32.totalorder %s1213_s12, %s903_s30  ;;  %p905_p0 = pneg %p1215_p11 }
  0x35   : > { %s908_s18 = scalar_lea.hbm %s1397_s0, 256  ;;  %p909_p7 = scmp.lt.u32.totalorder %s1213_s12, %s1397_s0 }
  0x36   : > { %p906_p3 = pnand %p905_p0, %p904_p13  ;;  %p910_p9 = scmp.lt.u32.totalorder %s908_s18, %s903_s30 }
  0x37   : > { %p912_p1 = scmp.lt.u32.totalorder %s903_s30, %s1213_s12 }
  0x38   : > { %p907_p5 = pneg %p906_p3  ;;  %p911_p2 = por %p910_p9, %p909_p7 }
  0x3a   : > { %p913_p4 = por %p912_p1, %p911_p2 }
  0x3c   : > { %p914_p6 = pnand %p913_p4, %p907_p5 }
  0x3e   : > { %917 = shalt.err (!%p914_p6)
}
  0x3f   : > { %s918_s16 = scalar_lea.vmem %s1219_s10, 128  ;;  %s1068_s7 = smov [#allocation2]  }
  0x40   : > { %p919_p8 = scmp.ne.s32.totalorder %s1219_s10, %s918_s16  ;;  %s923_s13 = sshll.u32 %s1068_s7, 4  ;;  %s924_s13 = int_to_ptr.vmem [resolvable:$false] %s923_s13 }
  0x41   : > { %s925_s17 = scalar_lea.vmem %s924_s13, 256  ;;  %p926_p3 = scmp.lt.s32.totalorder %s1219_s10, %s924_s13 }
  0x42   : > { %p921_p10 = pnand %p919_p8, %p905_p0  ;;  %p927_p7 = scmp.lt.s32.totalorder %s925_s17, %s918_s16 }
  0x44   : > { %p922_p13 = pneg %p921_p10  ;;  %p928_p9 = por %p927_p7, %p926_p3 }
  0x46   : > { %p929_p2 = pnand %p928_p9, %p922_p13 }
  0x48   : > { %932 = shalt.err (!%p929_p2)
}
  0x49   : > { %821 = dma.hbm_to_vmem [thread:$0]  (!%p1215_p11), %s1213_s12, 128, %s1219_s10, %s234_s20  }
  0x4a   : > { %p1416_p5 = scmp.ne.s32.totalorder %s1411_s29, 0 }
  0x4b   : > { %s1249_s30 = sand.u32 (!%p1416_p5), 1, %s1055_s22   ;;  %p1417_p0 = scmp.ne.s32.totalorder (!%p1416_p5), %s1409_s27, 0 }
  0x4c   : > { %253 = sbr.rel (%p1416_p5) target bundleno = 1174 (0x496), region = 32  ;;  %s1252_s18 = sshll.u32 (!%p1416_p5), %s1249_s30, 3 }
  0x4d   : > { %s256_s8 = scalar_lea.sflag (!%p1416_p5), [#allocation3], %s1249_s30  ;;  %s259_s19 = scalar_lea.vmem (!%p1416_p5), [#allocation2], %s1252_s18 }
  0x53   : > { %1034 = dma.done.wait (%p1417_p0), %s256_s8, 128  }
  0x54   : > { %1036 = vsyncadd (%p1417_p0), %s256_s8, 4294967168  ;;  %p1418_p11 = scmp.eq.s32.totalorder %s1132_s25, 0 }
  0x56   : > { %1038 = dma.done.wait (%p1418_p11), [#allocation6], 512   ;;  %p1419_p1 = pmov %p1418_p11 }
  0x57   : > { %v1069_v0 = vmov 0.0|0.0   ;;  %vm1070_vm0 = vmmov 0   ;;  %v1071_v1 = vmov 0.0   ;;  %v308_v2 = vld [vmem:[#allocation5] sm:$0xff]  ;;  %v309_v3 = vld [vmem:[#allocation5 + $0x8] sm:$0xff]  ;;  %v310_v4 = vld [vmem:[#allocation5 + $0x10] sm:$0xff]  ;;  %v394_v13 = vlaneseq }
  0x58   : > { %1040 = vsyncadd (%p1419_p1), [#allocation6], 4294966784  ;;  %788 = vmatprep.subr.bf16.mxu0 %v1069_v0  ;;  %774 = vmatprep.mubr.msk.f32.mxu0 %vm1070_vm0, %v1071_v1  ;;  %v789_v5 = vpack.c.bf16 %v309_v3, %v308_v2  ;;  %v311_v6 = vld [vmem:[#allocation5 + $0x18] sm:$0xff]  ;;  %vm313_vm1 = vcmask 261120   ;;  %v746_v9 = vld [vmem:[%s1399_s2] ss:$0 sm:$0xff] }
  0x59   : > { %794 = vmatprep.subr.bf16.mxu1 %v1069_v0  ;;  %785 = vmatprep.mubr.msk.f32.mxu1 %vm1070_vm0, %v1071_v1  ;;  %v792_v7 = vpack.c.bf16 %v311_v6, %v310_v4  ;;  %v307_v8 = vld [vmem:[%s259_s19] sm:$0xff]  ;;  %v395_v14 = vand.u32 127, %v394_v13  ;;  %s303_s12 = scalar_lea.vmem [#allocation10], %s1252_s18  ;;  %v415_v28 = vshrl.u32 %v394_v13, 7  ;;  %vm418_vm4 = vcmask 57344   ;;  %s291_s10 = scalar_lea.vmem [#allocation8], %s1249_s30 }
  0x5a   : > { %790 = vmatpush3.bf16.msra.mxu0 %v789_v5  ;;  %796 = vmatpush3.bf16.xpose.msra.mxu1 %v789_v5  ;;  %v493_v18 = vmul.f32 %v307_v8, %v307_v8  ;;  %v1072_v35 = vmov -0.5   ;;  %s748_s11 = sshll.u32 %s1132_s25, 3  ;;  %s1408_s20 = scalar_lea.vmem [#allocation7], %s1252_s18 }
  0x5b   : > { %791 = vmatprep.subr.bf16.mxu0 %v1069_v0  ;;  %797 = vmatprep.subr.bf16.mxu1 %v1069_v0  ;;  %v416_v31 = vsub.s32 %v395_v14, %v415_v28  ;;  %v502_v36 = vstv %s748_s11  ;;  %s1277_s16 = sshll.u32 %s303_s12, 4  ;;  %s528_s7 = sand.u32 1, %s1132_s25   ;;  %s579_s16 = int_to_ptr.vmem [resolvable:$true] %s1277_s16 }
  0x5c   : > { %v494_v20 = vsel %vm313_vm1, %v493_v18, 0.0  ;;  %v503_v37 = vadd.s32 %v502_v36, %v415_v28  ;;  %s752_s13 = sshll.u32 %s1132_s25, 4  ;;  %s562_s27 = sshll.u32 %s291_s10, 4  ;;  %s1286_s27 = int_to_ptr.vmem [resolvable:$true] %s562_s27 }
  0x5d   : > { %s1284_s19 = scalar_lea.hbm %s1401_s4, %s752_s13  ;;  %s751_s29 = sshll.u32 %s1132_s25, 7 }
  0x5e   : > { %793 = vmatpush3.bf16.msra.mxu0 %v792_v7  ;;  %vm504_vm6 = vcmp.lt.s32.totalorder %v503_v37, 16  ;;  %s1289_s11 = scalar_lea.sflag [#allocation9], %s528_s7  ;;  %s933_s26 = scalar_lea.vmem %s1286_s27, 16 }
  0x5f   : > { %p934_p4 = scmp.ne.s32.totalorder %s1286_s27, %s933_s26 }
  0x61   : > { %775 = vmatmul.mubr.msk.f32.vlgmr.msra.gmra.mrb[0].mxu0 %vm313_vm1, %v307_v8  ;;  %p935_p6 = pnand %p934_p4, %p1204_p12 }
  0x62   : > { %799 = vmatpush3.bf16.xpose.msra.mxu1 %v792_v7 }
  0x63   : > { %p936_p8 = pneg %p935_p6 }
 0x134   : > { %v383_v10 = vpop.f32.mrb[0].mxu0 }
 0x135   : > { %v393_v11 = vadd.f32 %v746_v9, %v383_v10  ;;  %v776_v12 = vpop.f32.mrb[1].mxu0 }
 0x137   : > { %396 = vmin.xlane.f32.xlu0 %v393_v11 }
 0x1c4   : > { %v397_v15 = vpop.xlane.xlu0 %396 }
 0x1c5   : > { %vm398_vm2 = vcmp.eq.f32.partialorder %v393_v11, %v397_v15 }
 0x1c6   : > { %v399_v16 = vsel %vm398_vm2, %v395_v14, 128 }
 0x1c7   : > { %v401_v17 = vshra.s32 %v399_v16, 16  ;;  %v400_v21 = vand.u32 65535, %v399_v16 }
 0x1c9   : > { %v403_v19 = vcvt.s32.f32 %v401_v17  ;;  %v402_v23 = vcvt.s32.f32 %v400_v21 }
 0x1cb   : > { %404 = vmin.xlane.f32.xlu0 %v403_v19 }
 0x1cf   : > { %495 = vadd.xlane.f32.xlu0 %v494_v20 }
 0x258   : > { %v405_v22 = vpop.xlane.xlu0 %404 }
 0x259   : > { %vm406_vm3 = vcmp.eq.f32.partialorder %v403_v19, %v405_v22  ;;  %v411_v27 = vcvt.f32.s32 %v405_v22 }
 0x25a   : > { %v407_v24 = vsel %vm406_vm3, %v402_v23, inf }
 0x25b   : > { %408 = vmin.xlane.f32.xlu1 %v407_v24  ;;  %v412_v30 = vshll.u32 %v411_v27, 16 }
 0x25c   : > { %v496_v25 = vpop.xlane.xlu0 %495 }
 0x25d   : > { %v497_v26 = vadd.f32 %v496_v25, %v393_v11 }
 0x25f   : > { %498 = vst [vmem:[%s303_s12] sm:$0xff] %v497_v26  ;;  %s1073_s12 = smov [#allocation8]  }
 0x2e8   : > { %v409_v29 = vpop.xlane.xlu1 %408 }
 0x2e9   : > { %v410_v32 = vcvt.f32.s32 %v409_v29 }
 0x2eb   : > { %v413_v33 = vadd.s32 %v412_v30, %v410_v32 }
 0x2ed   : > { %v417_v34 = vrot.slane %v413_v33, %v416_v31  ;;  %vm420_vm5 = vcmp.eq.s32.totalorder %v395_v14, %v413_v33 }
 0x2ee   : > { %786 = vmatmul.mubr.msk.f32.vlgmr.msra.gmra.mrb[0].mxu1 %vm420_vm5, %v1072_v35 }
 0x2ef   : > { %419 = vst.msk [vmem:[%s291_s10] sm:$0x1] %vm418_vm4, %v417_v34 }
 0x3c1   : > { %v488_v38 = vpop.f32.mrb[0].mxu1 }
 0x3c2   : > { %492 = vst.msk [vmem:[%s1408_s20] sm:$0xff] %vm313_vm1, %v488_v38  ;;  %v505_v39 = vsub.f32 %v307_v8, %v488_v38  ;;  %v787_v40 = vpop.f32.mrb[1].mxu1  ;;  %s937_s20 = sshll.u32 %s1073_s12, 4  ;;  %s938_s20 = int_to_ptr.vmem [resolvable:$false] %s937_s20 }
 0x3c3   : > { %s939_s17 = scalar_lea.vmem %s938_s20, 32  ;;  %p940_p10 = scmp.lt.s32.totalorder %s1286_s27, %s938_s20 }
 0x3c4   : > { %v508_v41 = vsel %vm504_vm6, %v505_v39, 0.0  ;;  %p941_p13 = scmp.lt.s32.totalorder %s939_s17, %s933_s26 }
 0x3c5   : > { %v509_v42 = vmul.f32 %v508_v41, %v508_v41 }
 0x3c6   : > { %p942_p3 = por %p941_p13, %p940_p10 }
 0x3c7   : > { %v510_v43 = vsel %vm313_vm1, %v509_v42, 0.0 }
 0x3c8   : > { %511 = vadd.xlane.f32.xlu1 %v510_v43  ;;  %p943_p7 = pnand %p942_p3, %p936_p8 }
 0x3ca   : > { %946 = shalt.err (!%p943_p7)
}
 0x3cb   : > { %s947_s10 = scalar_lea.hbm %s1284_s19, 16  ;;  %s951_s8 = scalar_lea.hbm %s1401_s4, 32 }
 0x3cc   : > { %p948_p9 = scmp.ne.s32.totalorder %s1284_s19, %s947_s10  ;;  %p952_p0 = scmp.lt.u32.totalorder %s1284_s19, %s1401_s4 }
 0x3cd   : > { %p953_p11 = scmp.lt.u32.totalorder %s951_s8, %s947_s10  ;;  %p955_p4 = scmp.lt.u32.totalorder %s947_s10, %s1284_s19 }
 0x3ce   : > { %p949_p2 = pnand %p948_p9, %p1204_p12 }
 0x3cf   : > { %p954_p1 = por %p953_p11, %p952_p0 }
 0x3d0   : > { %p950_p5 = pneg %p949_p2 }
 0x3d1   : > { %p956_p6 = por %p955_p4, %p954_p1 }
 0x3d3   : > { %p957_p8 = pnand %p956_p6, %p950_p5 }
 0x3d5   : > { %960 = shalt.err (!%p957_p8)
}
 0x3d6   : > { %809 = dma.vmem_to_hbm [thread:$0]  (%p1204_p12), %s1286_s27, 16, %s1284_s19, %s1289_s11  }
 0x3d7   : > { %s1318_s7 = scalar_lea.hbm %s1400_s3, %s751_s29  ;;  %s1420_s10 = scalar_lea.vmem [#allocation7], %s1252_s18 }
 0x3d8   : > { %s549_s13 = sshll.u32 %s1420_s10, 4  ;;  %s1329_s20 = scalar_lea.hbm %s1403_s6, %s751_s29  ;;  %s1322_s13 = int_to_ptr.vmem [resolvable:$true] %s549_s13 }
 0x3d9   : > { %s524_s19 = scalar_lea.sflag [#allocation4], %s1249_s30  ;;  %s961_s27 = scalar_lea.vmem %s1322_s13, 128 }
 0x3da   : > { %p962_p10 = scmp.ne.s32.totalorder %s1322_s13, %s961_s27  ;;  %s1074_s26 = smov [#allocation7]  }
 0x3db   : > { %s965_s18 = sshll.u32 %s1074_s26, 4  ;;  %s966_s18 = int_to_ptr.vmem [resolvable:$false] %s965_s18 }
 0x3dc   : > { %p963_p13 = pnand %p962_p10, %p1204_p12  ;;  %s967_s17 = scalar_lea.vmem %s966_s18, 256 }
 0x3dd   : > { %p968_p7 = scmp.lt.s32.totalorder %s1322_s13, %s966_s18  ;;  %p969_p9 = scmp.lt.s32.totalorder %s967_s17, %s961_s27 }
 0x3de   : > { %p964_p3 = pneg %p963_p13 }
 0x3df   : > { %p970_p2 = por %p969_p9, %p968_p7 }
 0x3e1   : > { %p971_p5 = pnand %p970_p2, %p964_p3 }
 0x3e3   : > { %974 = shalt.err (!%p971_p5)
}
 0x3e4   : > { %s975_s30 = scalar_lea.hbm %s1318_s7, 128  ;;  %s979_s8 = scalar_lea.hbm %s1400_s3, 256 }
 0x3e5   : > { %p976_p0 = scmp.ne.s32.totalorder %s1318_s7, %s975_s30  ;;  %p980_p4 = scmp.lt.u32.totalorder %s1318_s7, %s1400_s3 }
 0x3e6   : > { %p981_p6 = scmp.lt.u32.totalorder %s979_s8, %s975_s30  ;;  %p983_p10 = scmp.lt.u32.totalorder %s975_s30, %s1318_s7 }
 0x3e7   : > { %p977_p11 = pnand %p976_p0, %p1204_p12 }
 0x3e8   : > { %p982_p8 = por %p981_p6, %p980_p4 }
 0x3e9   : > { %p978_p1 = pneg %p977_p11 }
 0x3ea   : > { %p984_p13 = por %p983_p10, %p982_p8 }
 0x3ec   : > { %p985_p3 = pnand %p984_p13, %p978_p1 }
 0x3ee   : > { %988 = shalt.err (!%p985_p3)
}
 0x3ef   : > { %808 = dma.vmem_to_hbm [thread:$0]  (%p1204_p12), %s1322_s13, 128, %s1318_s7, %s524_s19  }
 0x3f0   : > { %s989_s27 = scalar_lea.vmem %s579_s16, 128  ;;  %s1075_s18 = smov [#allocation10]  }
 0x3f1   : > { %p990_p7 = scmp.ne.s32.totalorder %s579_s16, %s989_s27  ;;  %s993_s17 = sshll.u32 %s1075_s18, 4  ;;  %s994_s17 = int_to_ptr.vmem [resolvable:$false] %s993_s17 }
 0x3f2   : > { %s995_s30 = scalar_lea.vmem %s994_s17, 256  ;;  %p996_p5 = scmp.lt.s32.totalorder %s579_s16, %s994_s17 }
 0x3f3   : > { %p991_p9 = pnand %p990_p7, %p1204_p12  ;;  %p997_p0 = scmp.lt.s32.totalorder %s995_s30, %s989_s27 }
 0x3f5   : > { %p992_p2 = pneg %p991_p9  ;;  %p998_p11 = por %p997_p0, %p996_p5 }
 0x3f7   : > { %p999_p1 = pnand %p998_p11, %p992_p2 }
 0x3f9   : > { %1002 = shalt.err (!%p999_p1)
}
 0x3fa   : > { %s1003_s7 = scalar_lea.hbm %s1329_s20, 128  ;;  %s1007_s29 = scalar_lea.hbm %s1403_s6, 256 }
 0x3fb   : > { %p1004_p4 = scmp.ne.s32.totalorder %s1329_s20, %s1003_s7  ;;  %p1008_p10 = scmp.lt.u32.totalorder %s1329_s20, %s1403_s6 }
 0x3fc   : > { %p1009_p13 = scmp.lt.u32.totalorder %s1007_s29, %s1003_s7  ;;  %p1011_p7 = scmp.lt.u32.totalorder %s1003_s7, %s1329_s20 }
 0x3fd   : > { %p1005_p6 = pnand %p1004_p4, %p1204_p12 }
 0x3fe   : > { %p1010_p3 = por %p1009_p13, %p1008_p10 }
 0x3ff   : > { %p1006_p8 = pneg %p1005_p6 }
 0x400   : > { %p1012_p9 = por %p1011_p7, %p1010_p3 }
 0x402   : > { %p1013_p2 = pnand %p1012_p9, %p1006_p8 }
 0x404   : > { %1016 = shalt.err (!%p1013_p2)
}
 0x405   : > { %810 = dma.vmem_to_hbm [thread:$0]  (%p1204_p12), %s579_s16, 128, %s1329_s20, %s1289_s11   ;;  %vm521_vm7 = vcmask 0  }
 0x406   : > { %p304_p5 = scmp.lt.s32.totalorder %s1132_s25, 1 }
 0x408   : > { %s1429_s25 = smov (!%p304_p5, %s1132_s25), 1 }
 0x409   : > { %s306_s27 = scalar_lea.vmem %s1402_s5, %s1429_s25 }
 0x455   : > { %v512_v44 = vpop.xlane.xlu1 %511 }
 0x456   : > { %v513_v45 = vrot.slane %v512_v44, 4 }
 0x458   : > { %v514_v46 = vadd.f32 %v513_v45, %v512_v44 }
 0x45a   : > { %v515_v47 = vrot.slane %v514_v46, 2 }
 0x45c   : > { %v516_v48 = vadd.f32 %v515_v47, %v514_v46 }
 0x45e   : > { %v517_v49 = vrot.slane %v516_v48, 1 }
 0x460   : > { %v518_v50 = vadd.f32 %v517_v49, %v516_v48 }
 0x462   : > { %800 = vpush %v518_v50 }
 0x493   : > { %s801_s15 = spop %800 }
 0x494   : > { %v520_v51 = vstv %s801_s15 }
 0x495   : > { %522 = vst.msk [vmem:[%s306_s27] sm:$0x1] %vm521_vm7, %v520_v51 }
 0x496 PF: > { %s590_s16 = sand.u32 1, %s1051_s21   ;;  %p1421_p12 = scmp.ne.s32.totalorder %s1410_s28, 0 }
 0x497   : > { %p1422_p0 = scmp.ge.s32.totalorder %s1063_s24, 2  ;;  %s591_s11 = scalar_lea.sflag [#allocation4], %s590_s16 }
 0x499   : > { %p823_p11 = pnand %p1422_p0, %p1421_p12 }
 0x49b   : > { %1042 = dma.done.wait (!%p823_p11), %s591_s11, 128  }
 0x49c   : > { %1044 = vsyncadd (!%p823_p11), %s591_s11, 4294967168  ;;  %s1423_s20 = sadd.s32 4294967294, %s1063_s24  }
 0x49d   : > { %s599_s18 = sand.u32 1, %s1423_s20  }
 0x49e   : > { %s600_s17 = scalar_lea.sflag [#allocation9], %s599_s18 }
 0x49f   : > { %1046 = dma.done.wait (!%p823_p11), %s600_s17, 144  }
 0x4a0   : > { %1048 = vsyncadd (!%p823_p11), %s600_s17, 4294967152  ;;  %p24_p1 = scmp.ge.s32.totalorder %s1169_s9, 4   ;;  %s1424_s21 = smov %s1055_s22 }
 0x4a1   : > { %s1425_s22 = smov %s1059_s23  ;;  %s1426_s23 = smov %s1200_s14 }
 0x4a2   : > { %s1427_s24 = smov %s1169_s9  ;;  %26 = sbr.rel (!%p24_p1) target bundleno = 8 (0x8), region = 125 }
 0x4a9   :  { %619 = vsyncpa [#allocation3], 1 }
 0x4aa   :  { %621 = vsyncpa [#allocation3 + $0x1], 1 }
 0x4ab   :  { %622 = vsyncpa [#allocation6], 1 }
 0x4ac   :  { %623 = vsyncpa [#allocation4], 1 }
 0x4ad   :  { %625 = vsyncpa [#allocation4 + $0x1], 1 }
 0x4ae   :  { %626 = vsyncpa [#allocation9], 1 }
 0x4af   :  { %628 = vsyncpa [#allocation9 + $0x1], 1 }

// kernel: tpu_custom_call.1
= control target key start
LH: loop header
LB: loop body
LE: loop exit
PB: predicated region body
PF: predicated region fallthrough
CT: control target
= control target key end

     0   :  { %12 = vsyncpa [#allocation3], 0  ;;  %s1397_s0 = inlined_call_operand.hbm [shape: f32[16,32], index: 0, kind: input, shape index: {}]   ;;  %s1398_s1 = inlined_call_operand.hbm [shape: f32[32,128], index: 1, kind: input, shape index: {}]   ;;  %s1399_s2 = inlined_call_operand.vmem [shape: f32[1,128], index: 2, kind: input, shape index: {}]   ;;  %s1400_s3 = inlined_call_operand.hbm [shape: f32[16,32], index: 3, kind: output, shape index: {0}]   ;;  %s1401_s4 = inlined_call_operand.hbm [shape: s32[2,1,8], index: 4, kind: output, shape index: {1}]   ;;  %s1402_s5 = inlined_call_operand.vmem [shape: f32[2,1,1], index: 5, kind: output, shape index: {2}]   ;;  %s1403_s6 = inlined_call_operand.hbm [shape: f32[16,128], index: 6, kind: output, shape index: {3}]  }
   0x1   :  { %14 = vsyncpa [#allocation3 + $0x1], 0 }
   0x2   :  { %15 = vsyncpa [#allocation6], 0 }
   0x3   :  { %16 = vsyncpa [#allocation4], 0 }
   0x4   :  { %18 = vsyncpa [#allocation4 + $0x1], 0 }
   0x5   :  { %19 = vsyncpa [#allocation9], 0 }
   0x6   :  { %21 = vsyncpa [#allocation9 + $0x1], 0  ;;  %s1111_s21 = smov 0   ;;  %s1113_s22 = smov 0  }
   0x7   :  { %s1115_s23 = smov 0   ;;  %s1117_s24 = smov 0  }
   0x8 LB: > { %s1132_s25 = sadd.s32 4294967295, %s1063_s24   ;;  %s1407_s26 = sadd.s32 4294967294, %s1063_s24   ;;  %s1063_s24 = sphi %s1117_s24, %s1427_s24   ;;  %s1059_s23 = sphi %s1115_s23, %s1426_s23   ;;  %s1055_s22 = sphi %s1113_s22, %s1425_s22   ;;  %s1051_s21 = sphi %s1111_s21, %s1424_s21  }
   0x9   : > { %p47_p0 = scmp.ne.s32.totalorder %s1055_s22, %s1051_s21  ;;  %p1404_p1 = scmp.eq.s32.totalorder %s1132_s25, 0 }
   0xa   : > { %p119_p3 = scmp.eq.s32.totalorder %s1407_s26, 1  ;;  %p735_p5 = scmp.ge.s32.totalorder %s1063_s24, 1 }
   0xb   : > { %p1143_p4 = por %p1404_p1, %p47_p0  ;;  %p204_p7 = scmp.lt.s32.totalorder %s1063_s24, 3 }
   0xc   : > { %p1148_p6 = por %p119_p3, %p47_p0  ;;  %s1065_s30 = smov [#allocation5]  }
   0xd   : > { %s1409_s27 = scalar_select %p1143_p4, 1, 0 }
   0xe   : > { %s1410_s28 = scalar_select %p1148_p6, 1, 0 }
   0xf   : > { %p1153_p8 = pnand %p735_p5, %p204_p7  ;;  %s216_s7 = sshll.u32 %s1065_s30, 4  ;;  %s1157_s7 = int_to_ptr.vmem [resolvable:$true] %s216_s7 }
  0x10   : > { %s1169_s9 = sadd.s32 1, %s1063_s24   ;;  %s34_s10 = sadd.s32 1, %s1059_s23 }
  0x11   : > { %s1411_s29 = scalar_select %p1153_p8, 1, 0 }
  0x12   : > { %p814_p9 = pneg %p1153_p8  ;;  %s31_s11 = ssub.s32 %s1063_s24, %s1169_s9 }
  0x13   : > { %s875_s14 = scalar_lea.hbm %s1398_s1, 512 }
  0x14   : > { %p1164_p11 = pnand %p814_p9, %p1404_p1  ;;  %p876_p12 = scmp.ne.s32.totalorder %s1398_s1, %s875_s14 }
  0x15   : > { %p882_p5 = scmp.lt.u32.totalorder %s875_s14, %s1398_s1 }
  0x16   : > { %p877_p13 = pneg %p1164_p11 }
  0x18   : > { %p878_p0 = pnand %p877_p13, %p876_p12 }
  0x1a   : > { %p879_p3 = pneg %p878_p0 }
  0x1c   : > { %p884_p7 = pnand %p882_p5, %p879_p3 }
  0x1e   : > { %887 = shalt.err (!%p884_p7)
}
  0x1f   : > { %s888_s19 = scalar_lea.vmem %s1157_s7, 512  ;;  %p896_p2 = scmp.lt.s32.totalorder %s1157_s7, %s1157_s7 }
  0x20   : > { %p889_p9 = scmp.ne.s32.totalorder %s1157_s7, %s888_s19  ;;  %p897_p6 = scmp.lt.s32.totalorder %s888_s19, %s888_s19 }
  0x22   : > { %p891_p10 = pnand %p889_p9, %p877_p13  ;;  %p898_p4 = por %p897_p6, %p896_p2 }
  0x24   : > { %p892_p1 = pneg %p891_p10 }
  0x26   : > { %p899_p8 = pnand %p898_p4, %p892_p1 }
  0x28   : > { %902 = shalt.err (!%p899_p8)
}
  0x29   : > { %s1066_s20 = smov 128   ;;  %s1067_s30 = smov 8  }
  0x2a   : > { %817 = dma.hbm_to_vmem [thread:$0]  (!%p1164_p11), %s1398_s1, 512, %s1157_s7, [#allocation6], %s1066_s20, %s1066_s20, %s1067_s30  }
  0x2b   : > { %p32_p2 = scmp.eq.s32.totalorder %s31_s11, 0  ;;  %p41_p1 = scmp.ne.s32.totalorder %s1059_s23, %s1055_s22 }
  0x2c   : > { %p42_p4 = scmp.eq.s32.totalorder %s1063_s24, 0  ;;  %p833_p6 = scmp.lt.s32.totalorder %s1063_s24, 2 }
  0x2d   : > { %s1200_s14 = scalar_select %p32_p2, %s1059_s23, %s34_s10  }
  0x2e   : > { %p43_p8 = por %p42_p4, %p41_p1  ;;  %p1413_p10 = scmp.eq.s32.totalorder %s1132_s25, 1 }
  0x2f   : > { %s233_s16 = sand.u32 1, %s1059_s23   ;;  %s739_s17 = sshll.u32 %s1063_s24, 7 }
  0x30   : > { %p1204_p12 = por %p1413_p10, %p41_p1  ;;  %s738_s18 = sshll.u32 %s233_s16, 3 }
  0x31   : > { %s1213_s12 = scalar_lea.hbm %s1397_s0, %s739_s17  ;;  %s237_s7 = scalar_lea.vmem [#allocation2], %s738_s18 }
  0x32   : > { %s244_s10 = sshll.u32 %s237_s7, 4  ;;  %p1215_p11 = pnand %p833_p6, %p43_p8  ;;  %s1219_s10 = int_to_ptr.vmem [resolvable:$true] %s244_s10 }
  0x33   : > { %s234_s20 = scalar_lea.sflag [#allocation3], %s233_s16  ;;  %s903_s30 = scalar_lea.hbm %s1213_s12, 128 }
  0x34   : > { %p904_p13 = scmp.ne.s32.totalorder %s1213_s12, %s903_s30  ;;  %p905_p0 = pneg %p1215_p11 }
  0x35   : > { %s908_s18 = scalar_lea.hbm %s1397_s0, 256  ;;  %p909_p7 = scmp.lt.u32.totalorder %s1213_s12, %s1397_s0 }
  0x36   : > { %p906_p3 = pnand %p905_p0, %p904_p13  ;;  %p910_p9 = scmp.lt.u32.totalorder %s908_s18, %s903_s30 }
  0x37   : > { %p912_p1 = scmp.lt.u32.totalorder %s903_s30, %s1213_s12 }
  0x38   : > { %p907_p5 = pneg %p906_p3  ;;  %p911_p2 = por %p910_p9, %p909_p7 }
  0x3a   : > { %p913_p4 = por %p912_p1, %p911_p2 }
  0x3c   : > { %p914_p6 = pnand %p913_p4, %p907_p5 }
  0x3e   : > { %917 = shalt.err (!%p914_p6)
}
  0x3f   : > { %s918_s16 = scalar_lea.vmem %s1219_s10, 128  ;;  %s1068_s7 = smov [#allocation2]  }
  0x40   : > { %p919_p8 = scmp.ne.s32.totalorder %s1219_s10, %s918_s16  ;;  %s923_s13 = sshll.u32 %s1068_s7, 4  ;;  %s924_s13 = int_to_ptr.vmem [resolvable:$false] %s923_s13 }
  0x41   : > { %s925_s17 = scalar_lea.vmem %s924_s13, 256  ;;  %p926_p3 = scmp.lt.s32.totalorder %s1219_s10, %s924_s13 }
  0x42   : > { %p921_p10 = pnand %p919_p8, %p905_p0  ;;  %p927_p7 = scmp.lt.s32.totalorder %s925_s17, %s918_s16 }
  0x44   : > { %p922_p13 = pneg %p921_p10  ;;  %p928_p9 = por %p927_p7, %p926_p3 }
  0x46   : > { %p929_p2 = pnand %p928_p9, %p922_p13 }
  0x48   : > { %932 = shalt.err (!%p929_p2)
}
  0x49   : > { %821 = dma.hbm_to_vmem [thread:$0]  (!%p1215_p11), %s1213_s12, 128, %s1219_s10, %s234_s20  }
  0x4a   : > { %p1416_p5 = scmp.ne.s32.totalorder %s1411_s29, 0 }
  0x4b   : > { %s1249_s30 = sand.u32 (!%p1416_p5), 1, %s1055_s22   ;;  %p1417_p0 = scmp.ne.s32.totalorder (!%p1416_p5), %s1409_s27, 0 }
  0x4c   : > { %253 = sbr.rel (%p1416_p5) target bundleno = 1174 (0x496), region = 32  ;;  %s1252_s18 = sshll.u32 (!%p1416_p5), %s1249_s30, 3 }
  0x4d   : > { %s256_s8 = scalar_lea.sflag (!%p1416_p5), [#allocation3], %s1249_s30  ;;  %s259_s19 = scalar_lea.vmem (!%p1416_p5), [#allocation2], %s1252_s18 }
  0x53   : > { %1034 = dma.done.wait (%p1417_p0), %s256_s8, 128  }
  0x54   : > { %1036 = vsyncadd (%p1417_p0), %s256_s8, 4294967168  ;;  %p1418_p11 = scmp.eq.s32.totalorder %s1132_s25, 0 }
  0x56   : > { %1038 = dma.done.wait (%p1418_p11), [#allocation6], 512   ;;  %p1419_p1 = pmov %p1418_p11 }
  0x57   : > { %v1069_v0 = vmov 0.0|0.0   ;;  %vm1070_vm0 = vmmov 0   ;;  %v1071_v1 = vmov 0.0   ;;  %v308_v2 = vld [vmem:[#allocation5] sm:$0xff]  ;;  %v309_v3 = vld [vmem:[#allocation5 + $0x8] sm:$0xff]  ;;  %v310_v4 = vld [vmem:[#allocation5 + $0x10] sm:$0xff]  ;;  %v394_v13 = vlaneseq }
  0x58   : > { %1040 = vsyncadd (%p1419_p1), [#allocation6], 4294966784  ;;  %788 = vmatprep.subr.bf16.mxu0 %v1069_v0  ;;  %774 = vmatprep.mubr.msk.f32.mxu0 %vm1070_vm0, %v1071_v1  ;;  %v789_v5 = vpack.c.bf16 %v309_v3, %v308_v2  ;;  %v311_v6 = vld [vmem:[#allocation5 + $0x18] sm:$0xff]  ;;  %vm313_vm1 = vcmask 261120   ;;  %v746_v9 = vld [vmem:[%s1399_s2] ss:$0 sm:$0xff] }
  0x59   : > { %794 = vmatprep.subr.bf16.mxu1 %v1069_v0  ;;  %785 = vmatprep.mubr.msk.f32.mxu1 %vm1070_vm0, %v1071_v1  ;;  %v792_v7 = vpack.c.bf16 %v311_v6, %v310_v4  ;;  %v307_v8 = vld [vmem:[%s259_s19] sm:$0xff]  ;;  %v395_v14 = vand.u32 127, %v394_v13  ;;  %s303_s12 = scalar_lea.vmem [#allocation10], %s1252_s18  ;;  %v415_v28 = vshrl.u32 %v394_v13, 7  ;;  %vm418_vm4 = vcmask 57344   ;;  %s291_s10 = scalar_lea.vmem [#allocation8], %s1249_s30 }
  0x5a   : > { %790 = vmatpush3.bf16.msra.mxu0 %v789_v5  ;;  %796 = vmatpush3.bf16.xpose.msra.mxu1 %v789_v5  ;;  %v493_v18 = vmul.f32 %v307_v8, %v307_v8  ;;  %v1072_v35 = vmov -0.5   ;;  %s748_s11 = sshll.u32 %s1132_s25, 3  ;;  %s1408_s20 = scalar_lea.vmem [#allocation7], %s1252_s18 }
  0x5b   : > { %791 = vmatprep.subr.bf16.mxu0 %v1069_v0  ;;  %797 = vmatprep.subr.bf16.mxu1 %v1069_v0  ;;  %v416_v31 = vsub.s32 %v395_v14, %v415_v28  ;;  %v502_v36 = vstv %s748_s11  ;;  %s1277_s16 = sshll.u32 %s303_s12, 4  ;;  %s528_s7 = sand.u32 1, %s1132_s25   ;;  %s579_s16 = int_to_ptr.vmem [resolvable:$true] %s1277_s16 }
  0x5c   : > { %v494_v20 = vsel %vm313_vm1, %v493_v18, 0.0  ;;  %v503_v37 = vadd.s32 %v502_v36, %v415_v28  ;;  %s752_s13 = sshll.u32 %s1132_s25, 4  ;;  %s562_s27 = sshll.u32 %s291_s10, 4  ;;  %s1286_s27 = int_to_ptr.vmem [resolvable:$true] %s562_s27 }
  0x5d   : > { %s1284_s19 = scalar_lea.hbm %s1401_s4, %s752_s13  ;;  %s751_s29 = sshll.u32 %s1132_s25, 7 }
  0x5e   : > { %793 = vmatpush3.bf16.msra.mxu0 %v792_v7  ;;  %vm504_vm6 = vcmp.lt.s32.totalorder %v503_v37, 16  ;;  %s1289_s11 = scalar_lea.sflag [#allocation9], %s528_s7  ;;  %s933_s26 = scalar_lea.vmem %s1286_s27, 16 }
  0x5f   : > { %p934_p4 = scmp.ne.s32.totalorder %s1286_s27, %s933_s26 }
  0x61   : > { %775 = vmatmul.mubr.msk.f32.vlgmr.msra.gmra.mrb[0].mxu0 %vm313_vm1, %v307_v8  ;;  %p935_p6 = pnand %p934_p4, %p1204_p12 }
  0x62   : > { %799 = vmatpush3.bf16.xpose.msra.mxu1 %v792_v7 }
  0x63   : > { %p936_p8 = pneg %p935_p6 }
 0x134   : > { %v383_v10 = vpop.f32.mrb[0].mxu0 }
 0x135   : > { %v393_v11 = vadd.f32 %v746_v9, %v383_v10  ;;  %v776_v12 = vpop.f32.mrb[1].mxu0 }
 0x137   : > { %396 = vmin.xlane.f32.xlu0 %v393_v11 }
 0x1c4   : > { %v397_v15 = vpop.xlane.xlu0 %396 }
 0x1c5   : > { %vm398_vm2 = vcmp.eq.f32.partialorder %v393_v11, %v397_v15 }
 0x1c6   : > { %v399_v16 = vsel %vm398_vm2, %v395_v14, 128 }
 0x1c7   : > { %v401_v17 = vshra.s32 %v399_v16, 16  ;;  %v400_v21 = vand.u32 65535, %v399_v16 }
 0x1c9   : > { %v403_v19 = vcvt.s32.f32 %v401_v17  ;;  %v402_v23 = vcvt.s32.f32 %v400_v21 }
 0x1cb   : > { %404 = vmin.xlane.f32.xlu0 %v403_v19 }
 0x1cf   : > { %495 = vadd.xlane.f32.xlu0 %v494_v20 }
 0x258   : > { %v405_v22 = vpop.xlane.xlu0 %404 }
 0x259   : > { %vm406_vm3 = vcmp.eq.f32.partialorder %v403_v19, %v405_v22  ;;  %v411_v27 = vcvt.f32.s32 %v405_v22 }
 0x25a   : > { %v407_v24 = vsel %vm406_vm3, %v402_v23, inf }
 0x25b   : > { %408 = vmin.xlane.f32.xlu1 %v407_v24  ;;  %v412_v30 = vshll.u32 %v411_v27, 16 }
 0x25c   : > { %v496_v25 = vpop.xlane.xlu0 %495 }
 0x25d   : > { %v497_v26 = vadd.f32 %v496_v25, %v393_v11 }
 0x25f   : > { %498 = vst [vmem:[%s303_s12] sm:$0xff] %v497_v26  ;;  %s1073_s12 = smov [#allocation8]  }
 0x2e8   : > { %v409_v29 = vpop.xlane.xlu1 %408 }
 0x2e9   : > { %v410_v32 = vcvt.f32.s32 %v409_v29 }
 0x2eb   : > { %v413_v33 = vadd.s32 %v412_v30, %v410_v32 }
 0x2ed   : > { %v417_v34 = vrot.slane %v413_v33, %v416_v31  ;;  %vm420_vm5 = vcmp.eq.s32.totalorder %v395_v14, %v413_v33 }
 0x2ee   : > { %786 = vmatmul.mubr.msk.f32.vlgmr.msra.gmra.mrb[0].mxu1 %vm420_vm5, %v1072_v35 }
 0x2ef   : > { %419 = vst.msk [vmem:[%s291_s10] sm:$0x1] %vm418_vm4, %v417_v34 }
 0x3c1   : > { %v488_v38 = vpop.f32.mrb[0].mxu1 }
 0x3c2   : > { %492 = vst.msk [vmem:[%s1408_s20] sm:$0xff] %vm313_vm1, %v488_v38  ;;  %v505_v39 = vsub.f32 %v307_v8, %v488_v38  ;;  %v787_v40 = vpop.f32.mrb[1].mxu1  ;;  %s937_s20 = sshll.u32 %s1073_s12, 4  ;;  %s938_s20 = int_to_ptr.vmem [resolvable:$false] %s937_s20 }
 0x3c3   : > { %s939_s17 = scalar_lea.vmem %s938_s20, 32  ;;  %p940_p10 = scmp.lt.s32.totalorder %s1286_s27, %s938_s20 }
 0x3c4   : > { %v508_v41 = vsel %vm504_vm6, %v505_v39, 0.0  ;;  %p941_p13 = scmp.lt.s32.totalorder %s939_s17, %s933_s26 }
 0x3c5   : > { %v509_v42 = vmul.f32 %v508_v41, %v508_v41 }
 0x3c6   : > { %p942_p3 = por %p941_p13, %p940_p10 }
 0x3c7   : > { %v510_v43 = vsel %vm313_vm1, %v509_v42, 0.0 }
 0x3c8   : > { %511 = vadd.xlane.f32.xlu1 %v510_v43  ;;  %p943_p7 = pnand %p942_p3, %p936_p8 }
 0x3ca   : > { %946 = shalt.err (!%p943_p7)
}
 0x3cb   : > { %s947_s10 = scalar_lea.hbm %s1284_s19, 16  ;;  %s951_s8 = scalar_lea.hbm %s1401_s4, 32 }
 0x3cc   : > { %p948_p9 = scmp.ne.s32.totalorder %s1284_s19, %s947_s10  ;;  %p952_p0 = scmp.lt.u32.totalorder %s1284_s19, %s1401_s4 }
 0x3cd   : > { %p953_p11 = scmp.lt.u32.totalorder %s951_s8, %s947_s10  ;;  %p955_p4 = scmp.lt.u32.totalorder %s947_s10, %s1284_s19 }
 0x3ce   : > { %p949_p2 = pnand %p948_p9, %p1204_p12 }
 0x3cf   : > { %p954_p1 = por %p953_p11, %p952_p0 }
 0x3d0   : > { %p950_p5 = pneg %p949_p2 }
 0x3d1   : > { %p956_p6 = por %p955_p4, %p954_p1 }
 0x3d3   : > { %p957_p8 = pnand %p956_p6, %p950_p5 }
 0x3d5   : > { %960 = shalt.err (!%p957_p8)
}
 0x3d6   : > { %809 = dma.vmem_to_hbm [thread:$0]  (%p1204_p12), %s1286_s27, 16, %s1284_s19, %s1289_s11  }
 0x3d7   : > { %s1318_s7 = scalar_lea.hbm %s1400_s3, %s751_s29  ;;  %s1420_s10 = scalar_lea.vmem [#allocation7], %s1252_s18 }
 0x3d8   : > { %s549_s13 = sshll.u32 %s1420_s10, 4  ;;  %s1329_s20 = scalar_lea.hbm %s1403_s6, %s751_s29  ;;  %s1322_s13 = int_to_ptr.vmem [resolvable:$true] %s549_s13 }
 0x3d9   : > { %s524_s19 = scalar_lea.sflag [#allocation4], %s1249_s30  ;;  %s961_s27 = scalar_lea.vmem %s1322_s13, 128 }
 0x3da   : > { %p962_p10 = scmp.ne.s32.totalorder %s1322_s13, %s961_s27  ;;  %s1074_s26 = smov [#allocation7]  }
 0x3db   : > { %s965_s18 = sshll.u32 %s1074_s26, 4  ;;  %s966_s18 = int_to_ptr.vmem [resolvable:$false] %s965_s18 }
 0x3dc   : > { %p963_p13 = pnand %p962_p10, %p1204_p12  ;;  %s967_s17 = scalar_lea.vmem %s966_s18, 256 }
 0x3dd   : > { %p968_p7 = scmp.lt.s32.totalorder %s1322_s13, %s966_s18  ;;  %p969_p9 = scmp.lt.s32.totalorder %s967_s17, %s961_s27 }
 0x3de   : > { %p964_p3 = pneg %p963_p13 }
 0x3df   : > { %p970_p2 = por %p969_p9, %p968_p7 }
 0x3e1   : > { %p971_p5 = pnand %p970_p2, %p964_p3 }
 0x3e3   : > { %974 = shalt.err (!%p971_p5)
}
 0x3e4   : > { %s975_s30 = scalar_lea.hbm %s1318_s7, 128  ;;  %s979_s8 = scalar_lea.hbm %s1400_s3, 256 }
 0x3e5   : > { %p976_p0 = scmp.ne.s32.totalorder %s1318_s7, %s975_s30  ;;  %p980_p4 = scmp.lt.u32.totalorder %s1318_s7, %s1400_s3 }
 0x3e6   : > { %p981_p6 = scmp.lt.u32.totalorder %s979_s8, %s975_s30  ;;  %p983_p10 = scmp.lt.u32.totalorder %s975_s30, %s1318_s7 }
 0x3e7   : > { %p977_p11 = pnand %p976_p0, %p1204_p12 }
 0x3e8   : > { %p982_p8 = por %p981_p6, %p980_p4 }
 0x3e9   : > { %p978_p1 = pneg %p977_p11 }
 0x3ea   : > { %p984_p13 = por %p983_p10, %p982_p8 }
 0x3ec   : > { %p985_p3 = pnand %p984_p13, %p978_p1 }
 0x3ee   : > { %988 = shalt.err (!%p985_p3)
}
 0x3ef   : > { %808 = dma.vmem_to_hbm [thread:$0]  (%p1204_p12), %s1322_s13, 128, %s1318_s7, %s524_s19  }
 0x3f0   : > { %s989_s27 = scalar_lea.vmem %s579_s16, 128  ;;  %s1075_s18 = smov [#allocation10]  }
 0x3f1   : > { %p990_p7 = scmp.ne.s32.totalorder %s579_s16, %s989_s27  ;;  %s993_s17 = sshll.u32 %s1075_s18, 4  ;;  %s994_s17 = int_to_ptr.vmem [resolvable:$false] %s993_s17 }
 0x3f2   : > { %s995_s30 = scalar_lea.vmem %s994_s17, 256  ;;  %p996_p5 = scmp.lt.s32.totalorder %s579_s16, %s994_s17 }
 0x3f3   : > { %p991_p9 = pnand %p990_p7, %p1204_p12  ;;  %p997_p0 = scmp.lt.s32.totalorder %s995_s30, %s989_s27 }
 0x3f5   : > { %p992_p2 = pneg %p991_p9  ;;  %p998_p11 = por %p997_p0, %p996_p5 }
 0x3f7   : > { %p999_p1 = pnand %p998_p11, %p992_p2 }
 0x3f9   : > { %1002 = shalt.err (!%p999_p1)
}
 0x3fa   : > { %s1003_s7 = scalar_lea.hbm %s1329_s20, 128  ;;  %s1007_s29 = scalar_lea.hbm %s1403_s6, 256 }
 0x3fb   : > { %p1004_p4 = scmp.ne.s32.totalorder %s1329_s20, %s1003_s7  ;;  %p1008_p10 = scmp.lt.u32.totalorder %s1329_s20, %s1403_s6 }
 0x3fc   : > { %p1009_p13 = scmp.lt.u32.totalorder %s1007_s29, %s1003_s7  ;;  %p1011_p7 = scmp.lt.u32.totalorder %s1003_s7, %s1329_s20 }
 0x3fd   : > { %p1005_p6 = pnand %p1004_p4, %p1204_p12 }
 0x3fe   : > { %p1010_p3 = por %p1009_p13, %p1008_p10 }
 0x3ff   : > { %p1006_p8 = pneg %p1005_p6 }
 0x400   : > { %p1012_p9 = por %p1011_p7, %p1010_p3 }
 0x402   : > { %p1013_p2 = pnand %p1012_p9, %p1006_p8 }
 0x404   : > { %1016 = shalt.err (!%p1013_p2)
}
 0x405   : > { %810 = dma.vmem_to_hbm [thread:$0]  (%p1204_p12), %s579_s16, 128, %s1329_s20, %s1289_s11   ;;  %vm521_vm7 = vcmask 0  }
 0x406   : > { %p304_p5 = scmp.lt.s32.totalorder %s1132_s25, 1 }
 0x408   : > { %s1429_s25 = smov (!%p304_p5, %s1132_s25), 1 }
 0x409   : > { %s306_s27 = scalar_lea.vmem %s1402_s5, %s1429_s25 }
 0x455   : > { %v512_v44 = vpop.xlane.xlu1 %511 }
 0x456   : > { %v513_v45 = vrot.slane %v512_v44, 4 }
 0x458   : > { %v514_v46 = vadd.f32 %v513_v45, %v512_v44 }
 0x45a   : > { %v515_v47 = vrot.slane %v514_v46, 2 }
 0x45c   : > { %v516_v48 = vadd.f32 %v515_v47, %v514_v46 }
 0x45e   : > { %v517_v49 = vrot.slane %v516_v48, 1 }
 0x460   : > { %v518_v50 = vadd.f32 %v517_v49, %v516_v48 }
 0x462   : > { %800 = vpush %v518_v50 }
 0x493   : > { %s801_s15 = spop %800 }
 0x494   : > { %v520_v51 = vstv %s801_s15 }
 0x495   : > { %522 = vst.msk [vmem:[%s306_s27] sm:$0x1] %vm521_vm7, %v520_v51 }
 0x496 PF: > { %s590_s16 = sand.u32 1, %s1051_s21   ;;  %p1421_p12 = scmp.ne.s32.totalorder %s1410_s28, 0 }
 0x497   : > { %p1422_p0 = scmp.ge.s32.totalorder %s1063_s24, 2  ;;  %s591_s11 = scalar_lea.sflag [#allocation4], %s590_s16 }
 0x499   : > { %p823_p11 = pnand %p1422_p0, %p1421_p12 }
 0x49b   : > { %1042 = dma.done.wait (!%p823_p11), %s591_s11, 128  }
 0x49c   : > { %1044 = vsyncadd (!%p823_p11), %s591_s11, 4294967168  ;;  %s1423_s20 = sadd.s32 4294967294, %s1063_s24  }
 0x49d   : > { %s599_s18 = sand.u32 1, %s1423_s20  }
 0x49e   : > { %s600_s17 = scalar_lea.sflag [#allocation9], %s599_s18 }
 0x49f   : > { %1046 = dma.done.wait (!%p823_p11), %s600_s17, 144  }
 0x4a0   : > { %1048 = vsyncadd (!%p823_p11), %s600_s17, 4294967152  ;;  %p24_p1 = scmp.ge.s32.totalorder %s1169_s9, 4   ;;  %s1424_s21 = smov %s1055_s22 }
 0x4a1   : > { %s1425_s22 = smov %s1059_s23  ;;  %s1426_s23 = smov %s1200_s14 }
 0x4a2   : > { %s1427_s24 = smov %s1169_s9  ;;  %26 = sbr.rel (!%p24_p1) target bundleno = 8 (0x8), region = 125 }
 0x4a9   :  { %619 = vsyncpa [#allocation3], 1 }
 0x4aa   :  { %621 = vsyncpa [#allocation3 + $0x1], 1 }
 0x4ab   :  { %622 = vsyncpa [#allocation6], 1 }
 0x4ac   :  { %623 = vsyncpa [#allocation4], 1 }
 0x4ad   :  { %625 = vsyncpa [#allocation4 + $0x1], 1 }
 0x4ae   :  { %626 = vsyncpa [#allocation9], 1 }
 0x4af   :  { %628 = vsyncpa [#allocation9 + $0x1], 1 }

</bundles_post_ra>
